<compile_context>
chip_gen: v7x
topology: tpu7x:2x2x1
jax: 0.10.0
libtpu: 0.0.40
codegen_flags: <defaults>
</compile_context>

<pallas_src>
import jax
import jax.numpy as jnp
from jax.experimental import pallas as pl
from jax.experimental.pallas import tpu as pltpu


_TARGET_ROWS = 512          # rows (M = TB*N) per grid step to keep the MXU fed
_FORWARD = {}               # one-time-probed, cached jitted forward fn


def _vmem_capacity_bytes():
    """Per-core VMEM capacity; conservative default if the query is unavailable."""
    try:
        cap = getattr(pltpu.get_tpu_info(), "vmem_capacity_bytes", None)
        if cap:
            return int(cap)
    except Exception:
        pass
    return 64 * 1024 * 1024  # v7x-sized fallback (safe on 128 MiB parts too)


def _step_vmem_bytes(tb, N, D, E, x_itemsize):
    """Rough per-grid-step VMEM working set for a given batch tile."""
    m = tb * N
    io = 2 * 2 * m * N_safe(D) * x_itemsize if False else 2 * 2 * m * D * x_itemsize
    wts = (D * 3 * E + E * D) * 2 + 2 * (D + E) * 4      # bf16 weights + f32 affine
    inter = m * (3 * D + 7 * E) * 4                      # f32 intermediates (estimate)
    return io + wts + inter


def N_safe(v):  # kept only so _step_vmem_bytes reads cleanly; identity
    return v


def _pick_batch_tile(B, N, D, E, itemsize, vmem_budget):
    """Largest divisor TB of B whose working set fits `vmem_budget`, stopping
    once TB*N >= _TARGET_ROWS, and capped at B//2 so the parallel grid has at
    least two steps (keeps both v7x TensorCores busy)."""
    cap = B // 2 if B >= 2 else 1
    tb = 1
    for d in range(2, cap + 1):
        if B % d:
            continue
        if _step_vmem_bytes(d, N, D, E, itemsize) > vmem_budget:
            break
        tb = d
        if tb * N >= _TARGET_ROWS:
            break
    return tb


def _make_kernel(TB, N, D, E):
    M = TB * N
    inv_d = 1.0 / D
    inv_e = 1.0 / E

    def kernel(x_ref, gin_ref, bin_ref, wqkv_ref, gout_ref, bout_ref,
               wproj_ref, o_ref):
        # (TB, N, D) block -> (TB*N, D) rows so the matmuls see a large M.
        # This reshape is free when N % 8 == 0 (f32 sublane grouping); otherwise
        # it is still correct but may incur a VMEM relayout copy.
        x = x_ref[...].astype(jnp.float32).reshape(M, D)

        # LayerNorm over D, centered variance (numerically robust).
        mean = jnp.sum(x, axis=-1, keepdims=True) * inv_d
        xc = x - mean
        var = jnp.sum(xc * xc, axis=-1, keepdims=True) * inv_d
        y = xc * jax.lax.rsqrt(var + 1e-5)
        y = y * gin_ref[...] + bin_ref[...]

        # Fused QKV projection on the MXU (bf16 inputs, f32 accumulation).
        qkv = jnp.dot(y.astype(jnp.bfloat16), wqkv_ref[...],
                      preferred_element_type=jnp.float32)          # (M, 3E)
        q = qkv[:, :E]
        k = qkv[:, E:2 * E]
        v = qkv[:, 2 * E:]

        # Per-token L2 normalization over E via rsqrt on the squared norm.
        # (clamp at 1e-24 == (1e-12)^2 matches F.normalize's clamp_min on the norm)
        phi_q = q * jax.lax.rsqrt(
            jnp.maximum(jnp.sum(q * q, axis=-1, keepdims=True), 1e-24))
        phi_k = k * jax.lax.rsqrt(
            jnp.maximum(jnp.sum(k * k, axis=-1, keepdims=True), 1e-24))

        # Hydra channel attention: per-batch sum over tokens, broadcast back.
        kv = jnp.sum((phi_k * v).reshape(TB, N, E), axis=1, keepdims=True)
        attn = (phi_q.reshape(TB, N, E) * kv).reshape(M, E)

        # LayerNorm over E (centered variance), then the output projection.
        mean2 = jnp.sum(attn, axis=-1, keepdims=True) * inv_e
        ac = attn - mean2
        var2 = jnp.sum(ac * ac, axis=-1, keepdims=True) * inv_e
        z = ac * jax.lax.rsqrt(var2 + 1e-5)
        z = z * gout_ref[...] + bout_ref[...]

        out = jnp.dot(z.astype(jnp.bfloat16), wproj_ref[...],
                      preferred_element_type=jnp.float32)          # (M, D)
        o_ref[...] = out.reshape(TB, N, D).astype(o_ref.dtype)

    return kernel


def _build_forward(single_buffer):
    @jax.jit
    def forward(x, gamma_in, beta_in, wqkv_t, gamma_out, beta_out, wproj_t):
        B, N, D = x.shape
        E = wqkv_t.shape[1] // 3
        itemsize = jnp.dtype(x.dtype).itemsize

        capacity = _vmem_capacity_bytes()
        TB = _pick_batch_tile(B, N, D, E, itemsize, capacity // 2)
        footprint = _step_vmem_bytes(TB, N, D, E, itemsize)
        vmem_limit = int(min(capacity * 3 // 4, max(2 * footprint, 32 << 20)))

        const_kw = {"pipeline_mode": pl.Buffered(1)} if single_buffer else {}

        def const_spec(shape):
            # Grid-invariant inputs: single-buffer to halve their VMEM footprint.
            return pl.BlockSpec(shape, lambda i: (0, 0), **const_kw)

        kernel = _make_kernel(TB, N, D, E)
        grid = (B // TB,)

        cost = pl.CostEstimate(
            flops=2 * B * N * D * 3 * E + 2 * B * N * E * D,
            transcendentals=4 * B * N,
            bytes_accessed=(2 * B * N * D * itemsize            # x in + out (native D)
                            + (D * 3 * E + E * D) * 2           # bf16 weights
                            + 2 * (D + E) * 4),                 # gammas / betas
        )

        grid_spec = pltpu.PrefetchScalarGridSpec(
            num_scalar_prefetch=0,
            grid=grid,
            in_specs=[
                # Last dim = full array dim D: legal per the (8,128) rule, and
                # avoids any HBM-side pad/unpad traffic on x and the output.
                pl.BlockSpec((TB, N, D), lambda i: (i, 0, 0)),   # x
                const_spec((1, D)),                              # gamma_in
                const_spec((1, D)),                              # beta_in
                const_spec((D, 3 * E)),                          # fused Wqkv^T (bf16)
                const_spec((1, E)),                              # gamma_out
                const_spec((1, E)),                              # beta_out
                const_spec((E, D)),                              # Wproj^T (bf16)
            ],
            out_specs=pl.BlockSpec((TB, N, D), lambda i: (i, 0, 0)),
        )

        return pl.pallas_call(
            kernel,
            out_shape=jax.ShapeDtypeStruct((B, N, D), x.dtype),
            grid_spec=grid_spec,
            compiler_params=pltpu.CompilerParams(
                dimension_semantics=("parallel",),
                vmem_limit_bytes=vmem_limit,
            ),
            cost_estimate=cost,
        )(x, gamma_in, beta_in, wqkv_t, gamma_out, beta_out, wproj_t)

    return forward


def pack_params(raw):
    """Fuse QKV (de-interleaved), pre-transpose, cast weights to bf16.

    torch's reshape(..., E, 3) interleaves columns: q = 0::3, k = 1::3, v = 2::3.
    """
    w_qkv = raw["w_qkv"]                      # (3E, D) torch Linear layout
    w_proj = raw["w_proj"]                    # (D, E)  torch Linear layout
    D = w_qkv.shape[1]
    E = w_proj.shape[1]

    wqkv_t = jnp.concatenate(
        [w_qkv[0::3, :].T, w_qkv[1::3, :].T, w_qkv[2::3, :].T], axis=1
    ).astype(jnp.bfloat16)                    # (D, 3E)
    wproj_t = w_proj.T.astype(jnp.bfloat16)   # (E, D)

    row = lambda t: t.reshape(1, -1).astype(jnp.float32)
    return {
        "dims": (D, E),
        "wqkv_t": wqkv_t,
        "wproj_t": wproj_t,
        "gamma_in": row(raw["gamma_in"]),     # (1, D) f32
        "beta_in": row(raw["beta_in"]),
        "gamma_out": row(raw["gamma_out"]),   # (1, E) f32
        "beta_out": row(raw["beta_out"]),
    }


def hydra_channel_attention(x, packed):
    """x: (B, N, D). packed: output of pack_params(). Output dtype == x.dtype
    (pass bf16 x to halve HBM traffic on memory-bound parts like v5e)."""
    D, E = packed["dims"]
    assert x.shape[-1] == D, "channel dim mismatch between x and params"
    args = (x, packed["gamma_in"], packed["beta_in"], packed["wqkv_t"],
            packed["gamma_out"], packed["beta_out"], packed["wproj_t"])

    if "fn" not in _FORWARD:
        # One-time feature probe for pl.Buffered(1) single-buffering; cached.
        if hasattr(pl, "Buffered"):
            try:
                fn = _build_forward(single_buffer=True)
                out = jax.block_until_ready(fn(*args))
                _FORWARD["fn"] = fn
                return out
            except Exception:
                pass  # only this one-time probe falls back; never re-probed
        _FORWARD["fn"] = _build_forward(single_buffer=False)
    return _FORWARD["fn"](*args)


def make_params(key, in_dim, emb_dim):
    """Raw parameters in the PyTorch module's native layout."""
    k1, k2, k3, k4, k5, k6 = jax.random.split(key, 6)
    w_qkv = jax.random.normal(k1, (3 * emb_dim, in_dim), jnp.float32) * 0.05
    w_proj = jax.random.normal(k2, (in_dim, emb_dim), jnp.float32) * 0.05
    return {
        "w_qkv": w_qkv,                                     # (3E, D)
        "w_proj": w_proj,                                   # (D, E)
        "gamma_in": 1.0 + 0.1 * jax.random.normal(k3, (in_dim,), jnp.float32),
        "beta_in": 0.1 * jax.random.normal(k4, (in_dim,), jnp.float32),
        "gamma_out": 1.0 + 0.1 * jax.random.normal(k5, (emb_dim,), jnp.float32),
        "beta_out": 0.1 * jax.random.normal(k6, (emb_dim,), jnp.float32),
    }


def reference_jax(x, raw):
    """Pure-JAX (f32) reference of the PyTorch forward, from raw params."""
    def ln(t, g, b):
        m = jnp.mean(t, axis=-1, keepdims=True)
        v = jnp.mean((t - m) ** 2, axis=-1, keepdims=True)
        return (t - m) * jax.lax.rsqrt(v + 1e-5) * g + b

    y = ln(x, raw["gamma_in"], raw["beta_in"])
    qkv = y @ raw["w_qkv"].T                                 # (B, N, 3E)
    q, k, v = qkv[..., 0::3], qkv[..., 1::3], qkv[..., 2::3]
    nrm = lambda t: t / jnp.maximum(
        jnp.sqrt(jnp.sum(t * t, axis=-1, keepdims=True)), 1e-12)
    phi_q, phi_k = nrm(q), nrm(k)
    kv = jnp.sum(phi_k * v, axis=1, keepdims=True)           # (B, 1, E)
    attn = phi_q * kv                                        # (B, N, E)
    z = ln(attn, raw["gamma_out"], raw["beta_out"])
    return z @ raw["w_proj"].T                               # (B, N, D)


if __name__ == "__main__":
    B, N, in_dim = 2, 8, 32
    emb_dim = in_dim  # module default: emb_dim = in_dim

    key = jax.random.PRNGKey(0)
    kx, kp = jax.random.split(key)
    x = jax.random.normal(kx, (B, N, in_dim), jnp.float32)
    raw = make_params(kp, in_dim, emb_dim)
    packed = pack_params(raw)

    out = hydra_channel_attention(x, packed)
    out = jax.block_until_ready(out)

    ref = reference_jax(x, raw)
    assert out.shape == (B, N, in_dim)
    # bf16 matmul inputs with f32 accumulation: relaxed tolerance vs. f32 reference.
    assert jnp.allclose(out, ref, atol=5e-2, rtol=5e-2), "mismatch vs reference"

    print("KERNEL_OK")
</pallas_src>

<mosaic_0001>
module attributes {stable_mosaic.version = 11 : i64} {
  func.func @kernel(%arg0: i32, %arg1: memref<1x8x32xf32, #tpu.memory_space<vmem>>, %arg2: memref<1x32xf32, #tpu.memory_space<vmem>>, %arg3: memref<1x32xf32, #tpu.memory_space<vmem>>, %arg4: memref<32x96xbf16, #tpu.memory_space<vmem>>, %arg5: memref<1x32xf32, #tpu.memory_space<vmem>>, %arg6: memref<1x32xf32, #tpu.memory_space<vmem>>, %arg7: memref<32x32xbf16, #tpu.memory_space<vmem>>, %arg8: memref<1x8x32xf32, #tpu.memory_space<vmem>>) attributes {dimension_semantics = [#tpu.dimension_semantics<parallel>], iteration_bounds = array<i64: 2>, scalar_prefetch = 0 : i64, scratch_operands = 0 : i64, tpu.core_type = #tpu.core_type<tc>, window_params = [{transform_indices = @transform_0, window_bounds = array<i64: 1, 8, 32>}, {pipeline_mode = #tpu.pipeline_mode<synchronous>, transform_indices = @transform_1, window_bounds = array<i64: 1, 32>}, {pipeline_mode = #tpu.pipeline_mode<synchronous>, transform_indices = @transform_2, window_bounds = array<i64: 1, 32>}, {pipeline_mode = #tpu.pipeline_mode<synchronous>, transform_indices = @transform_3, window_bounds = array<i64: 32, 96>}, {pipeline_mode = #tpu.pipeline_mode<synchronous>, transform_indices = @transform_4, window_bounds = array<i64: 1, 32>}, {pipeline_mode = #tpu.pipeline_mode<synchronous>, transform_indices = @transform_5, window_bounds = array<i64: 1, 32>}, {pipeline_mode = #tpu.pipeline_mode<synchronous>, transform_indices = @transform_6, window_bounds = array<i64: 32, 32>}, {transform_indices = @transform_7, window_bounds = array<i64: 1, 8, 32>}]} {
    %c0 = arith.constant 0 : index
    %c0_0 = arith.constant 0 : index
    %c0_1 = arith.constant 0 : index
    %0 = vector.load %arg1[%c0, %c0_0, %c0_1] : memref<1x8x32xf32, #tpu.memory_space<vmem>>, vector<1x8x32xf32>
    %1 = vector.shape_cast %0 : vector<1x8x32xf32> to vector<8x32xf32>
    %cst = arith.constant dense<0.000000e+00> : vector<8xf32>
    %2 = vector.multi_reduction <add>, %1, %cst [1] : vector<8x32xf32> to vector<8xf32>
    %3 = vector.shape_cast %2 : vector<8xf32> to vector<8x1xf32>
    %cst_2 = arith.constant 3.125000e-02 : f32
    %4 = vector.broadcast %cst_2 : f32 to vector<8x1xf32>
    %5 = arith.mulf %3, %4 : vector<8x1xf32>
    %6 = vector.broadcast %5 : vector<8x1xf32> to vector<8x32xf32>
    %7 = arith.subf %1, %6 : vector<8x32xf32>
    %8 = arith.mulf %7, %7 : vector<8x32xf32>
    %cst_3 = arith.constant dense<0.000000e+00> : vector<8xf32>
    %9 = vector.multi_reduction <add>, %8, %cst_3 [1] : vector<8x32xf32> to vector<8xf32>
    %10 = vector.shape_cast %9 : vector<8xf32> to vector<8x1xf32>
    %cst_4 = arith.constant 3.125000e-02 : f32
    %11 = vector.broadcast %cst_4 : f32 to vector<8x1xf32>
    %12 = arith.mulf %10, %11 : vector<8x1xf32>
    %cst_5 = arith.constant 9.99999974E-6 : f32
    %13 = vector.broadcast %cst_5 : f32 to vector<8x1xf32>
    %14 = arith.addf %12, %13 : vector<8x1xf32>
    %15 = math.rsqrt %14 : vector<8x1xf32>
    %16 = vector.broadcast %15 : vector<8x1xf32> to vector<8x32xf32>
    %17 = arith.mulf %7, %16 : vector<8x32xf32>
    %c0_6 = arith.constant 0 : index
    %c0_7 = arith.constant 0 : index
    %18 = vector.load %arg2[%c0_6, %c0_7] : memref<1x32xf32, #tpu.memory_space<vmem>>, vector<1x32xf32>
    %19 = vector.broadcast %18 : vector<1x32xf32> to vector<8x32xf32>
    %20 = arith.mulf %17, %19 : vector<8x32xf32>
    %c0_8 = arith.constant 0 : index
    %c0_9 = arith.constant 0 : index
    %21 = vector.load %arg3[%c0_8, %c0_9] : memref<1x32xf32, #tpu.memory_space<vmem>>, vector<1x32xf32>
    %22 = vector.broadcast %21 : vector<1x32xf32> to vector<8x32xf32>
    %23 = arith.addf %20, %22 : vector<8x32xf32>
    %24 = arith.truncf %23 : vector<8x32xf32> to vector<8x32xbf16>
    %c0_10 = arith.constant 0 : index
    %c0_11 = arith.constant 0 : index
    %25 = vector.load %arg4[%c0_10, %c0_11] : memref<32x96xbf16, #tpu.memory_space<vmem>>, vector<32x96xbf16>
    %cst_12 = arith.constant dense<0.000000e+00> : vector<8x96xf32>
    %26 = tpu.matmul %24, %25, %cst_12 {dimension_numbers = #tpu.dot_dimension_numbers<[1], [0], [0], [1], [0, 0, 1, 1], [], []>} : vector<8x32xbf16>, vector<32x96xbf16>, vector<8x96xf32> -> vector<8x96xf32>
    %27 = vector.extract_strided_slice %26 {offsets = [0, 0], sizes = [8, 32], strides = [1, 1]} : vector<8x96xf32> to vector<8x32xf32>
    %28 = vector.extract_strided_slice %26 {offsets = [0, 32], sizes = [8, 32], strides = [1, 1]} : vector<8x96xf32> to vector<8x32xf32>
    %29 = vector.extract_strided_slice %26 {offsets = [0, 64], sizes = [8, 32], strides = [1, 1]} : vector<8x96xf32> to vector<8x32xf32>
    %30 = arith.mulf %27, %27 : vector<8x32xf32>
    %cst_13 = arith.constant dense<0.000000e+00> : vector<8xf32>
    %31 = vector.multi_reduction <add>, %30, %cst_13 [1] : vector<8x32xf32> to vector<8xf32>
    %32 = vector.shape_cast %31 : vector<8xf32> to vector<8x1xf32>
    %cst_14 = arith.constant 1.000000e-24 : f32
    %33 = vector.broadcast %cst_14 : f32 to vector<8x1xf32>
    %34 = arith.maximumf %32, %33 : vector<8x1xf32>
    %35 = math.rsqrt %34 : vector<8x1xf32>
    %36 = vector.broadcast %35 : vector<8x1xf32> to vector<8x32xf32>
    %37 = arith.mulf %27, %36 : vector<8x32xf32>
    %38 = arith.mulf %28, %28 : vector<8x32xf32>
    %cst_15 = arith.constant dense<0.000000e+00> : vector<8xf32>
    %39 = vector.multi_reduction <add>, %38, %cst_15 [1] : vector<8x32xf32> to vector<8xf32>
    %40 = vector.shape_cast %39 : vector<8xf32> to vector<8x1xf32>
    %cst_16 = arith.constant 1.000000e-24 : f32
    %41 = vector.broadcast %cst_16 : f32 to vector<8x1xf32>
    %42 = arith.maximumf %40, %41 : vector<8x1xf32>
    %43 = math.rsqrt %42 : vector<8x1xf32>
    %44 = vector.broadcast %43 : vector<8x1xf32> to vector<8x32xf32>
    %45 = arith.mulf %28, %44 : vector<8x32xf32>
    %46 = arith.mulf %45, %29 : vector<8x32xf32>
    %47 = vector.shape_cast %46 : vector<8x32xf32> to vector<1x8x32xf32>
    %cst_17 = arith.constant dense<0.000000e+00> : vector<1x32xf32>
    %48 = vector.multi_reduction <add>, %47, %cst_17 [1] : vector<1x8x32xf32> to vector<1x32xf32>
    %49 = vector.shape_cast %48 : vector<1x32xf32> to vector<1x1x32xf32>
    %50 = vector.shape_cast %37 : vector<8x32xf32> to vector<1x8x32xf32>
    %51 = vector.broadcast %49 : vector<1x1x32xf32> to vector<1x8x32xf32>
    %52 = arith.mulf %50, %51 : vector<1x8x32xf32>
    %53 = vector.shape_cast %52 : vector<1x8x32xf32> to vector<8x32xf32>
    %cst_18 = arith.constant dense<0.000000e+00> : vector<8xf32>
    %54 = vector.multi_reduction <add>, %53, %cst_18 [1] : vector<8x32xf32> to vector<8xf32>
    %55 = vector.shape_cast %54 : vector<8xf32> to vector<8x1xf32>
    %cst_19 = arith.constant 3.125000e-02 : f32
    %56 = vector.broadcast %cst_19 : f32 to vector<8x1xf32>
    %57 = arith.mulf %55, %56 : vector<8x1xf32>
    %58 = vector.broadcast %57 : vector<8x1xf32> to vector<8x32xf32>
    %59 = arith.subf %53, %58 : vector<8x32xf32>
    %60 = arith.mulf %59, %59 : vector<8x32xf32>
    %cst_20 = arith.constant dense<0.000000e+00> : vector<8xf32>
    %61 = vector.multi_reduction <add>, %60, %cst_20 [1] : vector<8x32xf32> to vector<8xf32>
    %62 = vector.shape_cast %61 : vector<8xf32> to vector<8x1xf32>
    %cst_21 = arith.constant 3.125000e-02 : f32
    %63 = vector.broadcast %cst_21 : f32 to vector<8x1xf32>
    %64 = arith.mulf %62, %63 : vector<8x1xf32>
    %cst_22 = arith.constant 9.99999974E-6 : f32
    %65 = vector.broadcast %cst_22 : f32 to vector<8x1xf32>
    %66 = arith.addf %64, %65 : vector<8x1xf32>
    %67 = math.rsqrt %66 : vector<8x1xf32>
    %68 = vector.broadcast %67 : vector<8x1xf32> to vector<8x32xf32>
    %69 = arith.mulf %59, %68 : vector<8x32xf32>
    %c0_23 = arith.constant 0 : index
    %c0_24 = arith.constant 0 : index
    %70 = vector.load %arg5[%c0_23, %c0_24] : memref<1x32xf32, #tpu.memory_space<vmem>>, vector<1x32xf32>
    %71 = vector.broadcast %70 : vector<1x32xf32> to vector<8x32xf32>
    %72 = arith.mulf %69, %71 : vector<8x32xf32>
    %c0_25 = arith.constant 0 : index
    %c0_26 = arith.constant 0 : index
    %73 = vector.load %arg6[%c0_25, %c0_26] : memref<1x32xf32, #tpu.memory_space<vmem>>, vector<1x32xf32>
    %74 = vector.broadcast %73 : vector<1x32xf32> to vector<8x32xf32>
    %75 = arith.addf %72, %74 : vector<8x32xf32>
    %76 = arith.truncf %75 : vector<8x32xf32> to vector<8x32xbf16>
    %c0_27 = arith.constant 0 : index
    %c0_28 = arith.constant 0 : index
    %77 = vector.load %arg7[%c0_27, %c0_28] : memref<32x32xbf16, #tpu.memory_space<vmem>>, vector<32x32xbf16>
    %cst_29 = arith.constant dense<0.000000e+00> : vector<8x32xf32>
    %78 = tpu.matmul %76, %77, %cst_29 {dimension_numbers = #tpu.dot_dimension_numbers<[1], [0], [0], [1], [0, 0, 1, 1], [], []>} : vector<8x32xbf16>, vector<32x32xbf16>, vector<8x32xf32> -> vector<8x32xf32>
    %79 = vector.shape_cast %78 : vector<8x32xf32> to vector<1x8x32xf32>
    %c0_30 = arith.constant 0 : index
    %c0_31 = arith.constant 0 : index
    %c0_32 = arith.constant 0 : index
    %80 = vector.load %arg8[%c0_30, %c0_31, %c0_32] : memref<1x8x32xf32, #tpu.memory_space<vmem>>, vector<1x8x32xf32>
    tpu.vector_store %arg8[%c0_30, %c0_31, %c0_32], %79 {strides = array<i32>} : memref<1x8x32xf32, #tpu.memory_space<vmem>>, vector<1x8x32xf32>,
    return
  }
  func.func @transform_0(%arg0: i32) -> (i32, i32, i32) {
    %c0_i32 = arith.constant 0 : i32
    %c0_i32_0 = arith.constant 0 : i32
    %c0_i32_1 = arith.constant 0 : i32
    return %arg0, %c0_i32, %c0_i32_0 : i32, i32, i32
  }
  func.func @transform_1(%arg0: i32) -> (i32, i32) {
    %c0_i32 = arith.constant 0 : i32
    %c0_i32_0 = arith.constant 0 : i32
    %c0_i32_1 = arith.constant 0 : i32
    return %c0_i32, %c0_i32_0 : i32, i32
  }
  func.func @transform_2(%arg0: i32) -> (i32, i32) {
    %c0_i32 = arith.constant 0 : i32
    %c0_i32_0 = arith.constant 0 : i32
    %c0_i32_1 = arith.constant 0 : i32
    return %c0_i32, %c0_i32_0 : i32, i32
  }
  func.func @transform_3(%arg0: i32) -> (i32, i32) {
    %c0_i32 = arith.constant 0 : i32
    %c0_i32_0 = arith.constant 0 : i32
    %c0_i32_1 = arith.constant 0 : i32
    return %c0_i32, %c0_i32_0 : i32, i32
  }
  func.func @transform_4(%arg0: i32) -> (i32, i32) {
    %c0_i32 = arith.constant 0 : i32
    %c0_i32_0 = arith.constant 0 : i32
    %c0_i32_1 = arith.constant 0 : i32
    return %c0_i32, %c0_i32_0 : i32, i32
  }
  func.func @transform_5(%arg0: i32) -> (i32, i32) {
    %c0_i32 = arith.constant 0 : i32
    %c0_i32_0 = arith.constant 0 : i32
    %c0_i32_1 = arith.constant 0 : i32
    return %c0_i32, %c0_i32_0 : i32, i32
  }
  func.func @transform_6(%arg0: i32) -> (i32, i32) {
    %c0_i32 = arith.constant 0 : i32
    %c0_i32_0 = arith.constant 0 : i32
    %c0_i32_1 = arith.constant 0 : i32
    return %c0_i32, %c0_i32_0 : i32, i32
  }
  func.func @transform_7(%arg0: i32) -> (i32, i32, i32) {
    %c0_i32 = arith.constant 0 : i32
    %c0_i32_0 = arith.constant 0 : i32
    %c0_i32_1 = arith.constant 0 : i32
    return %arg0, %c0_i32, %c0_i32_0 : i32, i32, i32
  }
}

module attributes {stable_mosaic.version = 11 : i64} {
  func.func @kernel(%arg0: i32, %arg1: memref<1x8x32xf32, #tpu.memory_space<vmem>>, %arg2: memref<1x32xf32, #tpu.memory_space<vmem>>, %arg3: memref<1x32xf32, #tpu.memory_space<vmem>>, %arg4: memref<32x96xbf16, #tpu.memory_space<vmem>>, %arg5: memref<1x32xf32, #tpu.memory_space<vmem>>, %arg6: memref<1x32xf32, #tpu.memory_space<vmem>>, %arg7: memref<32x32xbf16, #tpu.memory_space<vmem>>, %arg8: memref<1x8x32xf32, #tpu.memory_space<vmem>>) attributes {dimension_semantics = [#tpu.dimension_semantics<parallel>], iteration_bounds = array<i64: 2>, scalar_prefetch = 0 : i64, scratch_operands = 0 : i64, tpu.core_type = #tpu.core_type<tc>, window_params = [{transform_indices = @transform_0, window_bounds = array<i64: 1, 8, 32>}, {pipeline_mode = #tpu.pipeline_mode<synchronous>, transform_indices = @transform_1, window_bounds = array<i64: 1, 32>}, {pipeline_mode = #tpu.pipeline_mode<synchronous>, transform_indices = @transform_2, window_bounds = array<i64: 1, 32>}, {pipeline_mode = #tpu.pipeline_mode<synchronous>, transform_indices = @transform_3, window_bounds = array<i64: 32, 96>}, {pipeline_mode = #tpu.pipeline_mode<synchronous>, transform_indices = @transform_4, window_bounds = array<i64: 1, 32>}, {pipeline_mode = #tpu.pipeline_mode<synchronous>, transform_indices = @transform_5, window_bounds = array<i64: 1, 32>}, {pipeline_mode = #tpu.pipeline_mode<synchronous>, transform_indices = @transform_6, window_bounds = array<i64: 32, 32>}, {transform_indices = @transform_7, window_bounds = array<i64: 1, 8, 32>}]} {
    %c0 = arith.constant 0 : index
    %c0_0 = arith.constant 0 : index
    %c0_1 = arith.constant 0 : index
    %0 = vector.load %arg1[%c0, %c0_0, %c0_1] : memref<1x8x32xf32, #tpu.memory_space<vmem>>, vector<1x8x32xf32>
    %1 = vector.shape_cast %0 : vector<1x8x32xf32> to vector<8x32xf32>
    %cst = arith.constant dense<0.000000e+00> : vector<8xf32>
    %2 = vector.multi_reduction <add>, %1, %cst [1] : vector<8x32xf32> to vector<8xf32>
    %3 = vector.shape_cast %2 : vector<8xf32> to vector<8x1xf32>
    %cst_2 = arith.constant 3.125000e-02 : f32
    %4 = vector.broadcast %cst_2 : f32 to vector<8x1xf32>
    %5 = arith.mulf %3, %4 : vector<8x1xf32>
    %6 = vector.broadcast %5 : vector<8x1xf32> to vector<8x32xf32>
    %7 = arith.subf %1, %6 : vector<8x32xf32>
    %8 = arith.mulf %7, %7 : vector<8x32xf32>
    %cst_3 = arith.constant dense<0.000000e+00> : vector<8xf32>
    %9 = vector.multi_reduction <add>, %8, %cst_3 [1] : vector<8x32xf32> to vector<8xf32>
    %10 = vector.shape_cast %9 : vector<8xf32> to vector<8x1xf32>
    %cst_4 = arith.constant 3.125000e-02 : f32
    %11 = vector.broadcast %cst_4 : f32 to vector<8x1xf32>
    %12 = arith.mulf %10, %11 : vector<8x1xf32>
    %cst_5 = arith.constant 9.99999974E-6 : f32
    %13 = vector.broadcast %cst_5 : f32 to vector<8x1xf32>
    %14 = arith.addf %12, %13 : vector<8x1xf32>
    %15 = math.rsqrt %14 : vector<8x1xf32>
    %16 = vector.broadcast %15 : vector<8x1xf32> to vector<8x32xf32>
    %17 = arith.mulf %7, %16 : vector<8x32xf32>
    %c0_6 = arith.constant 0 : index
    %c0_7 = arith.constant 0 : index
    %18 = vector.load %arg2[%c0_6, %c0_7] : memref<1x32xf32, #tpu.memory_space<vmem>>, vector<1x32xf32>
    %19 = vector.broadcast %18 : vector<1x32xf32> to vector<8x32xf32>
    %20 = arith.mulf %17, %19 : vector<8x32xf32>
    %c0_8 = arith.constant 0 : index
    %c0_9 = arith.constant 0 : index
    %21 = vector.load %arg3[%c0_8, %c0_9] : memref<1x32xf32, #tpu.memory_space<vmem>>, vector<1x32xf32>
    %22 = vector.broadcast %21 : vector<1x32xf32> to vector<8x32xf32>
    %23 = arith.addf %20, %22 : vector<8x32xf32>
    %24 = arith.truncf %23 : vector<8x32xf32> to vector<8x32xbf16>
    %c0_10 = arith.constant 0 : index
    %c0_11 = arith.constant 0 : index
    %25 = vector.load %arg4[%c0_10, %c0_11] : memref<32x96xbf16, #tpu.memory_space<vmem>>, vector<32x96xbf16>
    %cst_12 = arith.constant dense<0.000000e+00> : vector<8x96xf32>
    %26 = tpu.matmul %24, %25, %cst_12 {dimension_numbers = #tpu.dot_dimension_numbers<[1], [0], [0], [1], [0, 0, 1, 1], [], []>} : vector<8x32xbf16>, vector<32x96xbf16>, vector<8x96xf32> -> vector<8x96xf32>
    %27 = vector.extract_strided_slice %26 {offsets = [0, 0], sizes = [8, 32], strides = [1, 1]} : vector<8x96xf32> to vector<8x32xf32>
    %28 = vector.extract_strided_slice %26 {offsets = [0, 32], sizes = [8, 32], strides = [1, 1]} : vector<8x96xf32> to vector<8x32xf32>
    %29 = vector.extract_strided_slice %26 {offsets = [0, 64], sizes = [8, 32], strides = [1, 1]} : vector<8x96xf32> to vector<8x32xf32>
    %30 = arith.mulf %27, %27 : vector<8x32xf32>
    %cst_13 = arith.constant dense<0.000000e+00> : vector<8xf32>
    %31 = vector.multi_reduction <add>, %30, %cst_13 [1] : vector<8x32xf32> to vector<8xf32>
    %32 = vector.shape_cast %31 : vector<8xf32> to vector<8x1xf32>
    %cst_14 = arith.constant 1.000000e-24 : f32
    %33 = vector.broadcast %cst_14 : f32 to vector<8x1xf32>
    %34 = arith.maximumf %32, %33 : vector<8x1xf32>
    %35 = math.rsqrt %34 : vector<8x1xf32>
    %36 = vector.broadcast %35 : vector<8x1xf32> to vector<8x32xf32>
    %37 = arith.mulf %27, %36 : vector<8x32xf32>
    %38 = arith.mulf %28, %28 : vector<8x32xf32>
    %cst_15 = arith.constant dense<0.000000e+00> : vector<8xf32>
    %39 = vector.multi_reduction <add>, %38, %cst_15 [1] : vector<8x32xf32> to vector<8xf32>
    %40 = vector.shape_cast %39 : vector<8xf32> to vector<8x1xf32>
    %cst_16 = arith.constant 1.000000e-24 : f32
    %41 = vector.broadcast %cst_16 : f32 to vector<8x1xf32>
    %42 = arith.maximumf %40, %41 : vector<8x1xf32>
    %43 = math.rsqrt %42 : vector<8x1xf32>
    %44 = vector.broadcast %43 : vector<8x1xf32> to vector<8x32xf32>
    %45 = arith.mulf %28, %44 : vector<8x32xf32>
    %46 = arith.mulf %45, %29 : vector<8x32xf32>
    %47 = vector.shape_cast %46 : vector<8x32xf32> to vector<1x8x32xf32>
    %cst_17 = arith.constant dense<0.000000e+00> : vector<1x32xf32>
    %48 = vector.multi_reduction <add>, %47, %cst_17 [1] : vector<1x8x32xf32> to vector<1x32xf32>
    %49 = vector.shape_cast %48 : vector<1x32xf32> to vector<1x1x32xf32>
    %50 = vector.shape_cast %37 : vector<8x32xf32> to vector<1x8x32xf32>
    %51 = vector.broadcast %49 : vector<1x1x32xf32> to vector<1x8x32xf32>
    %52 = arith.mulf %50, %51 : vector<1x8x32xf32>
    %53 = vector.shape_cast %52 : vector<1x8x32xf32> to vector<8x32xf32>
    %cst_18 = arith.constant dense<0.000000e+00> : vector<8xf32>
    %54 = vector.multi_reduction <add>, %53, %cst_18 [1] : vector<8x32xf32> to vector<8xf32>
    %55 = vector.shape_cast %54 : vector<8xf32> to vector<8x1xf32>
    %cst_19 = arith.constant 3.125000e-02 : f32
    %56 = vector.broadcast %cst_19 : f32 to vector<8x1xf32>
    %57 = arith.mulf %55, %56 : vector<8x1xf32>
    %58 = vector.broadcast %57 : vector<8x1xf32> to vector<8x32xf32>
    %59 = arith.subf %53, %58 : vector<8x32xf32>
    %60 = arith.mulf %59, %59 : vector<8x32xf32>
    %cst_20 = arith.constant dense<0.000000e+00> : vector<8xf32>
    %61 = vector.multi_reduction <add>, %60, %cst_20 [1] : vector<8x32xf32> to vector<8xf32>
    %62 = vector.shape_cast %61 : vector<8xf32> to vector<8x1xf32>
    %cst_21 = arith.constant 3.125000e-02 : f32
    %63 = vector.broadcast %cst_21 : f32 to vector<8x1xf32>
    %64 = arith.mulf %62, %63 : vector<8x1xf32>
    %cst_22 = arith.constant 9.99999974E-6 : f32
    %65 = vector.broadcast %cst_22 : f32 to vector<8x1xf32>
    %66 = arith.addf %64, %65 : vector<8x1xf32>
    %67 = math.rsqrt %66 : vector<8x1xf32>
    %68 = vector.broadcast %67 : vector<8x1xf32> to vector<8x32xf32>
    %69 = arith.mulf %59, %68 : vector<8x32xf32>
    %c0_23 = arith.constant 0 : index
    %c0_24 = arith.constant 0 : index
    %70 = vector.load %arg5[%c0_23, %c0_24] : memref<1x32xf32, #tpu.memory_space<vmem>>, vector<1x32xf32>
    %71 = vector.broadcast %70 : vector<1x32xf32> to vector<8x32xf32>
    %72 = arith.mulf %69, %71 : vector<8x32xf32>
    %c0_25 = arith.constant 0 : index
    %c0_26 = arith.constant 0 : index
    %73 = vector.load %arg6[%c0_25, %c0_26] : memref<1x32xf32, #tpu.memory_space<vmem>>, vector<1x32xf32>
    %74 = vector.broadcast %73 : vector<1x32xf32> to vector<8x32xf32>
    %75 = arith.addf %72, %74 : vector<8x32xf32>
    %76 = arith.truncf %75 : vector<8x32xf32> to vector<8x32xbf16>
    %c0_27 = arith.constant 0 : index
    %c0_28 = arith.constant 0 : index
    %77 = vector.load %arg7[%c0_27, %c0_28] : memref<32x32xbf16, #tpu.memory_space<vmem>>, vector<32x32xbf16>
    %cst_29 = arith.constant dense<0.000000e+00> : vector<8x32xf32>
    %78 = tpu.matmul %76, %77, %cst_29 {dimension_numbers = #tpu.dot_dimension_numbers<[1], [0], [0], [1], [0, 0, 1, 1], [], []>} : vector<8x32xbf16>, vector<32x32xbf16>, vector<8x32xf32> -> vector<8x32xf32>
    %79 = vector.shape_cast %78 : vector<8x32xf32> to vector<1x8x32xf32>
    %c0_30 = arith.constant 0 : index
    %c0_31 = arith.constant 0 : index
    %c0_32 = arith.constant 0 : index
    %80 = vector.load %arg8[%c0_30, %c0_31, %c0_32] : memref<1x8x32xf32, #tpu.memory_space<vmem>>, vector<1x8x32xf32>
    tpu.vector_store %arg8[%c0_30, %c0_31, %c0_32], %79 {strides = array<i32>} : memref<1x8x32xf32, #tpu.memory_space<vmem>>, vector<1x8x32xf32>,
    return
  }
  func.func @transform_0(%arg0: i32) -> (i32, i32, i32) {
    %c0_i32 = arith.constant 0 : i32
    %c0_i32_0 = arith.constant 0 : i32
    %c0_i32_1 = arith.constant 0 : i32
    return %arg0, %c0_i32, %c0_i32_0 : i32, i32, i32
  }
  func.func @transform_1(%arg0: i32) -> (i32, i32) {
    %c0_i32 = arith.constant 0 : i32
    %c0_i32_0 = arith.constant 0 : i32
    %c0_i32_1 = arith.constant 0 : i32
    return %c0_i32, %c0_i32_0 : i32, i32
  }
  func.func @transform_2(%arg0: i32) -> (i32, i32) {
    %c0_i32 = arith.constant 0 : i32
    %c0_i32_0 = arith.constant 0 : i32
    %c0_i32_1 = arith.constant 0 : i32
    return %c0_i32, %c0_i32_0 : i32, i32
  }
  func.func @transform_3(%arg0: i32) -> (i32, i32) {
    %c0_i32 = arith.constant 0 : i32
    %c0_i32_0 = arith.constant 0 : i32
    %c0_i32_1 = arith.constant 0 : i32
    return %c0_i32, %c0_i32_0 : i32, i32
  }
  func.func @transform_4(%arg0: i32) -> (i32, i32) {
    %c0_i32 = arith.constant 0 : i32
    %c0_i32_0 = arith.constant 0 : i32
    %c0_i32_1 = arith.constant 0 : i32
    return %c0_i32, %c0_i32_0 : i32, i32
  }
  func.func @transform_5(%arg0: i32) -> (i32, i32) {
    %c0_i32 = arith.constant 0 : i32
    %c0_i32_0 = arith.constant 0 : i32
    %c0_i32_1 = arith.constant 0 : i32
    return %c0_i32, %c0_i32_0 : i32, i32
  }
  func.func @transform_6(%arg0: i32) -> (i32, i32) {
    %c0_i32 = arith.constant 0 : i32
    %c0_i32_0 = arith.constant 0 : i32
    %c0_i32_1 = arith.constant 0 : i32
    return %c0_i32, %c0_i32_0 : i32, i32
  }
  func.func @transform_7(%arg0: i32) -> (i32, i32, i32) {
    %c0_i32 = arith.constant 0 : i32
    %c0_i32_0 = arith.constant 0 : i32
    %c0_i32_1 = arith.constant 0 : i32
    return %arg0, %c0_i32, %c0_i32_0 : i32, i32, i32
  }
}

</mosaic_0001>

<bundles_post_ra>
// kernel: forward.1
= control target key start
LH: loop header
LB: loop body
LE: loop exit
PB: predicated region body
PF: predicated region fallthrough
CT: control target
= control target key end

     0   :  { %12 = vsyncpa [#allocation3], 0  ;;  %s1151_s0 = inlined_call_operand.hbm [shape: f32[2,8,32], index: 0, kind: input, shape index: {}]   ;;  %s1152_s1 = inlined_call_operand.vmem [shape: f32[1,32], index: 1, kind: input, shape index: {}]   ;;  %s1153_s2 = inlined_call_operand.vmem [shape: f32[1,32], index: 2, kind: input, shape index: {}]   ;;  %s1154_s3 = inlined_call_operand.hbm [shape: bf16[32,96], index: 3, kind: input, shape index: {}]   ;;  %s1155_s4 = inlined_call_operand.vmem [shape: f32[1,32], index: 4, kind: input, shape index: {}]   ;;  %s1156_s5 = inlined_call_operand.vmem [shape: f32[1,32], index: 5, kind: input, shape index: {}]   ;;  %s1157_s6 = inlined_call_operand.vmem [shape: bf16[32,32], index: 6, kind: input, shape index: {}]   ;;  %s1158_s7 = inlined_call_operand.hbm [shape: f32[2,8,32], index: 7, kind: output, shape index: {}]  }
   0x1   :  { %14 = vsyncpa [#allocation3 + $0x1], 0 }
   0x2   :  { %15 = vsyncpa [#allocation6], 0 }
   0x3   :  { %16 = vsyncpa [#allocation4], 0 }
   0x4   :  { %18 = vsyncpa [#allocation4 + $0x1], 0  ;;  %s918_s24 = smov 0   ;;  %s920_s25 = smov 0  }
   0x5   :  { %s922_s26 = smov 0   ;;  %s924_s27 = smov 0  }
   0x6 LB: > { %s939_s28 = sadd.s32 4294967295, %s868_s27   ;;  %s620_s29 = sadd.s32 4294967294, %s868_s27   ;;  %s868_s27 = sphi %s924_s27, %s1178_s27   ;;  %s864_s26 = sphi %s922_s26, %s1177_s26   ;;  %s860_s25 = sphi %s920_s25, %s1176_s25   ;;  %s856_s24 = sphi %s918_s24, %s1175_s24  }
   0x7   : > { %p44_p0 = scmp.ne.s32.totalorder %s860_s25, %s856_s24  ;;  %p1159_p1 = scmp.eq.s32.totalorder %s939_s28, 0 }
   0x8   : > { %p200_p3 = scmp.eq.s32.totalorder %s620_s29, 1  ;;  %p621_p5 = scmp.ge.s32.totalorder %s868_s27, 1 }
   0x9   : > { %p948_p4 = por %p1159_p1, %p44_p0  ;;  %p207_p7 = scmp.lt.s32.totalorder %s868_s27, 3 }
   0xa   : > { %p953_p6 = por %p200_p3, %p44_p0  ;;  %s870_s10 = smov [#allocation5]  }
   0xb   : > { %s1162_s30 = scalar_select %p948_p4, 1, 0 }
   0xc   : > { %s1163_s8 = scalar_select %p953_p6, 1, 0 }
   0xd   : > { %p958_p8 = pnand %p621_p5, %p207_p7  ;;  %s225_s11 = sshll.u32 %s870_s10, 4  ;;  %s962_s11 = int_to_ptr.vmem [resolvable:$true] %s225_s11 }
   0xe   : > { %s974_s13 = sadd.s32 1, %s868_s27   ;;  %s31_s14 = sadd.s32 1, %s864_s26 }
   0xf   : > { %s1164_s9 = scalar_select %p958_p8, 1, 0 }
  0x10   : > { %p674_p9 = pneg %p958_p8  ;;  %s28_s15 = ssub.s32 %s868_s27, %s974_s13 }
  0x11   : > { %s740_s18 = scalar_lea.hbm %s1154_s3, 256 }
  0x12   : > { %p969_p11 = pnand %p674_p9, %p1159_p1  ;;  %p741_p12 = scmp.ne.s32.totalorder %s1154_s3, %s740_s18 }
  0x13   : > { %p747_p5 = scmp.lt.u32.totalorder %s740_s18, %s1154_s3 }
  0x14   : > { %p742_p13 = pneg %p969_p11 }
  0x16   : > { %p743_p0 = pnand %p742_p13, %p741_p12 }
  0x18   : > { %p744_p3 = pneg %p743_p0 }
  0x1a   : > { %p749_p7 = pnand %p747_p5, %p744_p3 }
  0x1c   : > { %752 = shalt.err (!%p749_p7)
}
  0x1d   : > { %s753_s23 = scalar_lea.vmem %s962_s11, 256  ;;  %p761_p2 = scmp.lt.s32.totalorder %s962_s11, %s962_s11 }
  0x1e   : > { %p754_p9 = scmp.ne.s32.totalorder %s962_s11, %s753_s23  ;;  %p762_p6 = scmp.lt.s32.totalorder %s753_s23, %s753_s23 }
  0x20   : > { %p756_p10 = pnand %p754_p9, %p742_p13  ;;  %p763_p4 = por %p762_p6, %p761_p2 }
  0x22   : > { %p757_p1 = pneg %p756_p10 }
  0x24   : > { %p764_p8 = pnand %p763_p4, %p757_p1 }
  0x26   : > { %767 = shalt.err (!%p764_p8)
}
  0x27   : > { %s871_s29 = smov 64   ;;  %s872_s10 = smov 4  }
  0x28   : > { %677 = dma.hbm_to_vmem [thread:$0]  (!%p969_p11), %s1154_s3, 256, %s962_s11, [#allocation6], %s871_s29, %s871_s29, %s872_s10  }
  0x29   : > { %p29_p2 = scmp.eq.s32.totalorder %s28_s15, 0  ;;  %p38_p1 = scmp.ne.s32.totalorder %s864_s26, %s860_s25 }
  0x2a   : > { %p39_p4 = scmp.eq.s32.totalorder %s868_s27, 0  ;;  %p687_p6 = scmp.lt.s32.totalorder %s868_s27, 2 }
  0x2b   : > { %s1005_s18 = scalar_select %p29_p2, %s864_s26, %s31_s14  }
  0x2c   : > { %p40_p8 = por %p39_p4, %p38_p1  ;;  %p1166_p10 = scmp.eq.s32.totalorder %s939_s28, 1 }
  0x2d   : > { %s248_s20 = sand.u32 1, %s864_s26   ;;  %s625_s21 = sshll.u32 %s868_s27, 7 }
  0x2e   : > { %p1009_p12 = por %p1166_p10, %p38_p1  ;;  %s624_s22 = sshll.u32 %s248_s20, 3 }
  0x2f   : > { %s1018_s16 = scalar_lea.hbm %s1151_s0, %s625_s21  ;;  %s252_s11 = scalar_lea.vmem [#allocation2], %s624_s22 }
  0x30   : > { %s259_s14 = sshll.u32 %s252_s11, 4  ;;  %p1020_p11 = pnand %p687_p6, %p40_p8  ;;  %s1024_s14 = int_to_ptr.vmem [resolvable:$true] %s259_s14 }
  0x31   : > { %s249_s29 = scalar_lea.sflag [#allocation3], %s248_s20  ;;  %s768_s10 = scalar_lea.hbm %s1018_s16, 128 }
  0x32   : > { %p769_p13 = scmp.ne.s32.totalorder %s1018_s16, %s768_s10  ;;  %p770_p0 = pneg %p1020_p11 }
  0x33   : > { %s773_s22 = scalar_lea.hbm %s1151_s0, 256  ;;  %p774_p7 = scmp.lt.u32.totalorder %s1018_s16, %s1151_s0 }
  0x34   : > { %p771_p3 = pnand %p770_p0, %p769_p13  ;;  %p775_p9 = scmp.lt.u32.totalorder %s773_s22, %s768_s10 }
  0x35   : > { %p777_p1 = scmp.lt.u32.totalorder %s768_s10, %s1018_s16 }
  0x36   : > { %p772_p5 = pneg %p771_p3  ;;  %p776_p2 = por %p775_p9, %p774_p7 }
  0x38   : > { %p778_p4 = por %p777_p1, %p776_p2 }
  0x3a   : > { %p779_p6 = pnand %p778_p4, %p772_p5 }
  0x3c   : > { %782 = shalt.err (!%p779_p6)
}
  0x3d   : > { %s783_s20 = scalar_lea.vmem %s1024_s14, 128  ;;  %s873_s11 = smov [#allocation2]  }
  0x3e   : > { %p784_p8 = scmp.ne.s32.totalorder %s1024_s14, %s783_s20  ;;  %s788_s17 = sshll.u32 %s873_s11, 4  ;;  %s789_s17 = int_to_ptr.vmem [resolvable:$false] %s788_s17 }
  0x3f   : > { %s790_s21 = scalar_lea.vmem %s789_s17, 256  ;;  %p791_p3 = scmp.lt.s32.totalorder %s1024_s14, %s789_s17 }
  0x40   : > { %p786_p10 = pnand %p784_p8, %p770_p0  ;;  %p792_p7 = scmp.lt.s32.totalorder %s790_s21, %s783_s20 }
  0x42   : > { %p787_p13 = pneg %p786_p10  ;;  %p793_p9 = por %p792_p7, %p791_p3 }
  0x44   : > { %p794_p2 = pnand %p793_p9, %p787_p13 }
  0x46   : > { %797 = shalt.err (!%p794_p2)
}
  0x47   : > { %681 = dma.hbm_to_vmem [thread:$0]  (!%p1020_p11), %s1018_s16, 128, %s1024_s14, %s249_s29  }
  0x48   : > { %p1169_p5 = scmp.ne.s32.totalorder %s1164_s9, 0 }
  0x49   : > { %s1054_s10 = sand.u32 (!%p1169_p5), 1, %s860_s25   ;;  %p1170_p0 = scmp.ne.s32.totalorder (!%p1169_p5), %s1162_s30, 0 }
  0x4a   : > { %268 = sbr.rel (%p1169_p5) target bundleno = 1562 (0x61a), region = 48  ;;  %s627_s22 = sshll.u32 (!%p1169_p5), %s1054_s10, 3 }
  0x4b   : > { %s271_s12 = scalar_lea.sflag (!%p1169_p5), [#allocation3], %s1054_s10  ;;  %s274_s23 = scalar_lea.vmem (!%p1169_p5), [#allocation2], %s627_s22 }
  0x51   : > { %843 = dma.done.wait (%p1170_p0), %s271_s12, 128  }
  0x52   : > { %845 = vsyncadd (%p1170_p0), %s271_s12, 4294967168  ;;  %p1171_p11 = scmp.eq.s32.totalorder %s939_s28, 0 }
  0x54   : > { %847 = dma.done.wait (%p1171_p11), [#allocation6], 256   ;;  %p1172_p1 = pmov %p1171_p11 }
  0x55   : > { %vm311_vm0 = vcmask 261120   ;;  %v310_v0 = vld [vmem:[%s274_s23] sm:$0xff]  ;;  %v728_v7 = vld [vmem:[#allocation5] sm:$0xff]   ;;  %v874_v8 = vmov 0.0   ;;  %vm875_vm1 = vmmov 0   ;;  %v729_v9 = vld [vmem:[#allocation5 + $0x8] sm:$0xff]  }
  0x56   : > { %849 = vsyncadd (%p1172_p1), [#allocation6], 4294967040  ;;  %v312_v1 = vsel %vm311_vm0, %v310_v0, 0.0  ;;  %650 = vmatprep.subr.bf16.mxu0 %v874_v8  ;;  %654 = vmatprep.mubr.msk.bf16.mxu0 %vm875_vm1, %v874_v8  ;;  %v630_v14 = vld [vmem:[%s1152_s1] ss:$0 sm:$0xff]  ;;  %s876_s15 = smov 96  }
  0x57   : > { %313 = vadd.xlane.f32.xlu0 %v312_v1  ;;  %651 = vmatpush3.bf16.msra.mxu0 %v728_v7  ;;  %v631_v16 = vld [vmem:[%s1153_s2] ss:$0 sm:$0xff]  ;;  %vm423_vm2 = vcmask 523520   ;;  %v731_v54 = vld [vmem:[%s1157_s6 + $0x8] sm:$0xff]   ;;  %s641_s9 = sshll.u32 %s939_s28, 7  ;;  %s308_s16 = scalar_lea.vmem [#allocation7], %s627_s22 }
  0x58   : > { %658 = vmatprep.subr.bf16.mxu1 %v874_v8  ;;  %652 = vmatprep.subr.bf16.mxu0 %v874_v8  ;;  %v730_v53 = vld [vmem:[%s1157_s6] sm:$0xff]   ;;  %s540_s14 = sshll.u32 %s308_s16, 4  ;;  %s1106_s20 = scalar_lea.hbm %s1158_s7, %s641_s9  ;;  %s1108_s14 = int_to_ptr.vmem [resolvable:$true] %s540_s14 }
  0x59   : > { %662 = vmatprep.mubr.msk.bf16.mxu1 %vm875_vm1, %v874_v8  ;;  %659 = vmatpush3.bf16.msra.mxu1 %v730_v53  ;;  %v635_v59 = vld [vmem:[%s1155_s4] ss:$0 sm:$0xff]  ;;  %s527_s11 = scalar_lea.sflag [#allocation4], %s1054_s10  ;;  %s798_s28 = scalar_lea.vmem %s1108_s14, 128 }
  0x5a   : > { %660 = vmatprep.subr.bf16.mxu1 %v874_v8  ;;  %v636_v61 = vld [vmem:[%s1156_s5] ss:$0 sm:$0xff]  ;;  %p799_p4 = scmp.ne.s32.totalorder %s1108_s14, %s798_s28  ;;  %s877_s22 = smov [#allocation7]  }
  0x5b   : > { %653 = vmatpush3.bf16.msra.mxu0 %v729_v9  ;;  %s802_s17 = sshll.u32 %s877_s22, 4  ;;  %s803_s17 = int_to_ptr.vmem [resolvable:$false] %s802_s17 }
  0x5c   : > { %p800_p6 = pnand %p799_p4, %p1009_p12  ;;  %s804_s21 = scalar_lea.vmem %s803_s17, 256 }
  0x5d   : > { %661 = vmatpush3.bf16.msra.mxu1 %v731_v54  ;;  %p805_p10 = scmp.lt.s32.totalorder %s1108_s14, %s803_s17  ;;  %p806_p13 = scmp.lt.s32.totalorder %s804_s21, %s798_s28 }
  0x5e   : > { %p801_p8 = pneg %p800_p6 }
  0x5f   : > { %p807_p3 = por %p806_p13, %p805_p10 }
  0x61   : > { %p808_p7 = pnand %p807_p3, %p801_p8 }
  0xe4   : > { %v314_v2 = vpop.xlane.xlu0 %313 }
  0xe5   : > { %v315_v3 = vmul.f32 0.03125, %v314_v2 }
  0xe7   : > { %v316_v4 = vsub.f32 %v310_v0, %v315_v3 }
  0xe9   : > { %v317_v5 = vmul.f32 %v316_v4, %v316_v4 }
  0xeb   : > { %v318_v6 = vsel %vm311_vm0, %v317_v5, 0.0 }
  0xec   : > { %319 = vadd.xlane.f32.xlu0 %v318_v6 }
 0x179   : > { %v320_v10 = vpop.xlane.xlu0 %319 }
 0x17a   : > { %v321_v11 = vmul.f32 0.03125, %v320_v10 }
 0x17c   : > { %v322_v12 = vadd.f32 1e-05, %v321_v11 }
 0x17e   : > { %732 = vrsqrt.f32 %v322_v12 }
 0x188   : > { %v733_v13 = vpop.eup %732 }
 0x189   : > { %v324_v15 = vmul.f32 %v733_v13, %v316_v4 }
 0x18b   : > { %v332_v17 = vmul.f32 %v630_v14, %v324_v15 }
 0x18d   : > { %v340_v18 = vadd.f32 %v631_v16, %v332_v17 }
 0x18f   : > { %v341_v19 = vpack.c.bf16 %v340_v18, %v340_v18 }
 0x191   : > { %655 = vmatmul.mubr.msk.bf16.vlgmr.msra.gmra.mrb[0].mxu0 %vm311_vm0, %v341_v19 }
 0x264   : > { %v395_v20 = vpop.f32.mrb[0].mxu0 }
 0x265   : > { %419 = vrot.lane.b32.xlu0 %v395_v20, %s876_s15  ;;  %v656_v21 = vpop.f32.mrb[1].mxu0  ;;  %v401_v22 = vmul.f32 %v395_v20, %v395_v20 }
 0x266   : > { %v398_v23 = vpop.f32.mrb[2].mxu0 }
 0x267   : > { %409 = vrot.lane.b32.xlu1 %v401_v22, %s876_s15  ;;  %v657_v24 = vpop.f32.mrb[3].mxu0  ;;  %v402_v25 = vsel %vm311_vm0, %v401_v22, 0.0 }
 0x284   : > { %403 = vadd.xlane.f32.xlu0 %v402_v25 }
 0x2d7   : > { %v420_v32 = vpop.permute.xlu0 %419 }
 0x2d9   : > { %v410_v26 = vpop.permute.xlu1 %409 }
 0x2da   : > { %v412_v27 = vsel %vm311_vm0, %v410_v26, 0.0 }
 0x2db   : > { %413 = vadd.xlane.f32.xlu1 %v412_v27 }
 0x311   : > { %v404_v41 = vpop.xlane.xlu0 %403 }
 0x312   : > { %v405_v42 = vmax.f32 %v404_v41, 1e-24 }
 0x368   : > { %v414_v28 = vpop.xlane.xlu1 %413 }
 0x369   : > { %v415_v29 = vmax.f32 %v414_v28, 1e-24 }
 0x36b   : > { %734 = vrsqrt.f32 %v415_v29 }
 0x36c   : > { %736 = vrsqrt.f32 %v405_v42 }
 0x375   : > { %v735_v30 = vpop.eup %734 }
 0x376   : > { %v417_v31 = vmul.f32 %v735_v30, %v395_v20  ;;  %v737_v43 = vpop.eup %736 }
 0x377   : > { %v407_v44 = vmul.f32 %v737_v43, %v395_v20 }
 0x378   : > { %v422_v33 = vmul.f32 %v420_v32, %v417_v31 }
 0x37a   : > { %v424_v34 = vsel %vm423_vm2, %v422_v33, 0.0 }
 0x37b   : > { %v425_v35 = vrot.slane %v424_v34, 4 }
 0x37d   : > { %v426_v36 = vadd.f32 %v425_v35, %v424_v34 }
 0x37f   : > { %v427_v37 = vrot.slane %v426_v36, 2 }
 0x381   : > { %v428_v38 = vadd.f32 %v427_v37, %v426_v36 }
 0x383   : > { %v429_v39 = vrot.slane %v428_v38, 1 }
 0x385   : > { %v430_v40 = vadd.f32 %v429_v39, %v428_v38 }
 0x387   : > { %432 = vrot.lane.b32.xlu1 %v430_v40, %s876_s15 }
 0x3f9   : > { %v433_v45 = vpop.permute.xlu1 %432 }
 0x3fa   : > { %v435_v46 = vmul.f32 %v433_v45, %v407_v44 }
 0x3fc   : > { %v436_v47 = vsel %vm311_vm0, %v435_v46, 0.0 }
 0x3fd   : > { %437 = vadd.xlane.f32.xlu1 %v436_v47 }
 0x48a   : > { %v438_v48 = vpop.xlane.xlu1 %437 }
 0x48b   : > { %v439_v49 = vmul.f32 0.03125, %v438_v48 }
 0x48d   : > { %v440_v50 = vsub.f32 %v435_v46, %v439_v49 }
 0x48f   : > { %v441_v51 = vmul.f32 %v440_v50, %v440_v50 }
 0x491   : > { %v442_v52 = vsel %vm311_vm0, %v441_v51, 0.0 }
 0x492   : > { %443 = vadd.xlane.f32.xlu0 %v442_v52 }
 0x51f   : > { %v444_v55 = vpop.xlane.xlu0 %443 }
 0x520   : > { %v445_v56 = vmul.f32 0.03125, %v444_v55 }
 0x522   : > { %v446_v57 = vadd.f32 1e-05, %v445_v56 }
 0x524   : > { %738 = vrsqrt.f32 %v446_v57 }
 0x52e   : > { %v739_v58 = vpop.eup %738 }
 0x52f   : > { %v448_v60 = vmul.f32 %v739_v58, %v440_v50 }
 0x531   : > { %v456_v62 = vmul.f32 %v635_v59, %v448_v60 }
 0x533   : > { %v464_v63 = vadd.f32 %v636_v61, %v456_v62 }
 0x535   : > { %v465_v0 = vpack.c.bf16 %v464_v63, %v464_v63 }
 0x537   : > { %663 = vmatmul.mubr.msk.bf16.vlgmr.msra.gmra.mrb[0].mxu1 %vm311_vm0, %v465_v0 }
 0x60a   : > { %v519_v1 = vpop.f32.mrb[0].mxu1 }
 0x60b   : > { %525 = vst.msk [vmem:[%s308_s16] sm:$0xff] %vm311_vm0, %v519_v1  ;;  %v664_v2 = vpop.f32.mrb[1].mxu1 }
 0x60c   : > { %v522_v3 = vpop.f32.mrb[2].mxu1 }
 0x60d   : > { %811 = shalt.err (!%p808_p7)
}
 0x60e   : > { %s812_s10 = scalar_lea.hbm %s1106_s20, 128  ;;  %s816_s30 = scalar_lea.hbm %s1158_s7, 256 }
 0x60f   : > { %p813_p9 = scmp.ne.s32.totalorder %s1106_s20, %s812_s10  ;;  %p817_p0 = scmp.lt.u32.totalorder %s1106_s20, %s1158_s7 }
 0x610   : > { %p818_p11 = scmp.lt.u32.totalorder %s816_s30, %s812_s10  ;;  %p820_p4 = scmp.lt.u32.totalorder %s812_s10, %s1106_s20 }
 0x611   : > { %p814_p2 = pnand %p813_p9, %p1009_p12 }
 0x612   : > { %p819_p1 = por %p818_p11, %p817_p0 }
 0x613   : > { %p815_p5 = pneg %p814_p2 }
 0x614   : > { %p821_p6 = por %p820_p4, %p819_p1 }
 0x616   : > { %p822_p8 = pnand %p821_p6, %p815_p5 }
 0x618   : > { %825 = shalt.err (!%p822_p8)
}
 0x619   : > { %672 = dma.vmem_to_hbm [thread:$0]  (%p1009_p12), %s1108_s14, 128, %s1106_s20, %s527_s11   ;;  %v665_v4 = vpop.f32.mrb[3].mxu1 }
 0x61a PF: > { %s552_s15 = sand.u32 1, %s856_s24   ;;  %p1173_p10 = scmp.ne.s32.totalorder %s1163_s8, 0 }
 0x61b   : > { %p1174_p13 = scmp.ge.s32.totalorder %s868_s27, 2  ;;  %s553_s29 = scalar_lea.sflag [#allocation4], %s552_s15 }
 0x61d   : > { %p683_p3 = pnand %p1174_p13, %p1173_p10 }
 0x61f   : > { %851 = dma.done.wait (!%p683_p3), %s553_s29, 128  }
 0x620   : > { %853 = vsyncadd (!%p683_p3), %s553_s29, 4294967168  ;;  %p21_p7 = scmp.ge.s32.totalorder %s974_s13, 4   ;;  %s1175_s24 = smov %s860_s25 }
 0x621   : > { %s1176_s25 = smov %s864_s26  ;;  %s1177_s26 = smov %s1005_s18 }
 0x622   : > { %s1178_s27 = smov %s974_s13  ;;  %23 = sbr.rel (!%p21_p7) target bundleno = 6 (0x6), region = 97 }
 0x629   :  { %558 = vsyncpa [#allocation3], 1 }
 0x62a   :  { %560 = vsyncpa [#allocation3 + $0x1], 1 }
 0x62b   :  { %561 = vsyncpa [#allocation6], 1 }
 0x62c   :  { %562 = vsyncpa [#allocation4], 1 }
 0x62d   :  { %564 = vsyncpa [#allocation4 + $0x1], 1 }

// kernel: forward.1
= control target key start
LH: loop header
LB: loop body
LE: loop exit
PB: predicated region body
PF: predicated region fallthrough
CT: control target
= control target key end

     0   :  { %12 = vsyncpa [#allocation3], 0  ;;  %s1151_s0 = inlined_call_operand.hbm [shape: f32[2,8,32], index: 0, kind: input, shape index: {}]   ;;  %s1152_s1 = inlined_call_operand.vmem [shape: f32[1,32], index: 1, kind: input, shape index: {}]   ;;  %s1153_s2 = inlined_call_operand.vmem [shape: f32[1,32], index: 2, kind: input, shape index: {}]   ;;  %s1154_s3 = inlined_call_operand.hbm [shape: bf16[32,96], index: 3, kind: input, shape index: {}]   ;;  %s1155_s4 = inlined_call_operand.vmem [shape: f32[1,32], index: 4, kind: input, shape index: {}]   ;;  %s1156_s5 = inlined_call_operand.vmem [shape: f32[1,32], index: 5, kind: input, shape index: {}]   ;;  %s1157_s6 = inlined_call_operand.vmem [shape: bf16[32,32], index: 6, kind: input, shape index: {}]   ;;  %s1158_s7 = inlined_call_operand.hbm [shape: f32[2,8,32], index: 7, kind: output, shape index: {}]  }
   0x1   :  { %14 = vsyncpa [#allocation3 + $0x1], 0 }
   0x2   :  { %15 = vsyncpa [#allocation6], 0 }
   0x3   :  { %16 = vsyncpa [#allocation4], 0 }
   0x4   :  { %18 = vsyncpa [#allocation4 + $0x1], 0  ;;  %s918_s24 = smov 0   ;;  %s920_s25 = smov 0  }
   0x5   :  { %s922_s26 = smov 0   ;;  %s924_s27 = smov 0  }
   0x6 LB: > { %s939_s28 = sadd.s32 4294967295, %s868_s27   ;;  %s620_s29 = sadd.s32 4294967294, %s868_s27   ;;  %s868_s27 = sphi %s924_s27, %s1178_s27   ;;  %s864_s26 = sphi %s922_s26, %s1177_s26   ;;  %s860_s25 = sphi %s920_s25, %s1176_s25   ;;  %s856_s24 = sphi %s918_s24, %s1175_s24  }
   0x7   : > { %p44_p0 = scmp.ne.s32.totalorder %s860_s25, %s856_s24  ;;  %p1159_p1 = scmp.eq.s32.totalorder %s939_s28, 0 }
   0x8   : > { %p200_p3 = scmp.eq.s32.totalorder %s620_s29, 1  ;;  %p621_p5 = scmp.ge.s32.totalorder %s868_s27, 1 }
   0x9   : > { %p948_p4 = por %p1159_p1, %p44_p0  ;;  %p207_p7 = scmp.lt.s32.totalorder %s868_s27, 3 }
   0xa   : > { %p953_p6 = por %p200_p3, %p44_p0  ;;  %s870_s10 = smov [#allocation5]  }
   0xb   : > { %s1162_s30 = scalar_select %p948_p4, 1, 0 }
   0xc   : > { %s1163_s8 = scalar_select %p953_p6, 1, 0 }
   0xd   : > { %p958_p8 = pnand %p621_p5, %p207_p7  ;;  %s225_s11 = sshll.u32 %s870_s10, 4  ;;  %s962_s11 = int_to_ptr.vmem [resolvable:$true] %s225_s11 }
   0xe   : > { %s974_s13 = sadd.s32 1, %s868_s27   ;;  %s31_s14 = sadd.s32 1, %s864_s26 }
   0xf   : > { %s1164_s9 = scalar_select %p958_p8, 1, 0 }
  0x10   : > { %p674_p9 = pneg %p958_p8  ;;  %s28_s15 = ssub.s32 %s868_s27, %s974_s13 }
  0x11   : > { %s740_s18 = scalar_lea.hbm %s1154_s3, 256 }
  0x12   : > { %p969_p11 = pnand %p674_p9, %p1159_p1  ;;  %p741_p12 = scmp.ne.s32.totalorder %s1154_s3, %s740_s18 }
  0x13   : > { %p747_p5 = scmp.lt.u32.totalorder %s740_s18, %s1154_s3 }
  0x14   : > { %p742_p13 = pneg %p969_p11 }
  0x16   : > { %p743_p0 = pnand %p742_p13, %p741_p12 }
  0x18   : > { %p744_p3 = pneg %p743_p0 }
  0x1a   : > { %p749_p7 = pnand %p747_p5, %p744_p3 }
  0x1c   : > { %752 = shalt.err (!%p749_p7)
}
  0x1d   : > { %s753_s23 = scalar_lea.vmem %s962_s11, 256  ;;  %p761_p2 = scmp.lt.s32.totalorder %s962_s11, %s962_s11 }
  0x1e   : > { %p754_p9 = scmp.ne.s32.totalorder %s962_s11, %s753_s23  ;;  %p762_p6 = scmp.lt.s32.totalorder %s753_s23, %s753_s23 }
  0x20   : > { %p756_p10 = pnand %p754_p9, %p742_p13  ;;  %p763_p4 = por %p762_p6, %p761_p2 }
  0x22   : > { %p757_p1 = pneg %p756_p10 }
  0x24   : > { %p764_p8 = pnand %p763_p4, %p757_p1 }
  0x26   : > { %767 = shalt.err (!%p764_p8)
}
  0x27   : > { %s871_s29 = smov 64   ;;  %s872_s10 = smov 4  }
  0x28   : > { %677 = dma.hbm_to_vmem [thread:$0]  (!%p969_p11), %s1154_s3, 256, %s962_s11, [#allocation6], %s871_s29, %s871_s29, %s872_s10  }
  0x29   : > { %p29_p2 = scmp.eq.s32.totalorder %s28_s15, 0  ;;  %p38_p1 = scmp.ne.s32.totalorder %s864_s26, %s860_s25 }
  0x2a   : > { %p39_p4 = scmp.eq.s32.totalorder %s868_s27, 0  ;;  %p687_p6 = scmp.lt.s32.totalorder %s868_s27, 2 }
  0x2b   : > { %s1005_s18 = scalar_select %p29_p2, %s864_s26, %s31_s14  }
  0x2c   : > { %p40_p8 = por %p39_p4, %p38_p1  ;;  %p1166_p10 = scmp.eq.s32.totalorder %s939_s28, 1 }
  0x2d   : > { %s248_s20 = sand.u32 1, %s864_s26   ;;  %s625_s21 = sshll.u32 %s868_s27, 7 }
  0x2e   : > { %p1009_p12 = por %p1166_p10, %p38_p1  ;;  %s624_s22 = sshll.u32 %s248_s20, 3 }
  0x2f   : > { %s1018_s16 = scalar_lea.hbm %s1151_s0, %s625_s21  ;;  %s252_s11 = scalar_lea.vmem [#allocation2], %s624_s22 }
  0x30   : > { %s259_s14 = sshll.u32 %s252_s11, 4  ;;  %p1020_p11 = pnand %p687_p6, %p40_p8  ;;  %s1024_s14 = int_to_ptr.vmem [resolvable:$true] %s259_s14 }
  0x31   : > { %s249_s29 = scalar_lea.sflag [#allocation3], %s248_s20  ;;  %s768_s10 = scalar_lea.hbm %s1018_s16, 128 }
  0x32   : > { %p769_p13 = scmp.ne.s32.totalorder %s1018_s16, %s768_s10  ;;  %p770_p0 = pneg %p1020_p11 }
  0x33   : > { %s773_s22 = scalar_lea.hbm %s1151_s0, 256  ;;  %p774_p7 = scmp.lt.u32.totalorder %s1018_s16, %s1151_s0 }
  0x34   : > { %p771_p3 = pnand %p770_p0, %p769_p13  ;;  %p775_p9 = scmp.lt.u32.totalorder %s773_s22, %s768_s10 }
  0x35   : > { %p777_p1 = scmp.lt.u32.totalorder %s768_s10, %s1018_s16 }
  0x36   : > { %p772_p5 = pneg %p771_p3  ;;  %p776_p2 = por %p775_p9, %p774_p7 }
  0x38   : > { %p778_p4 = por %p777_p1, %p776_p2 }
  0x3a   : > { %p779_p6 = pnand %p778_p4, %p772_p5 }
  0x3c   : > { %782 = shalt.err (!%p779_p6)
}
  0x3d   : > { %s783_s20 = scalar_lea.vmem %s1024_s14, 128  ;;  %s873_s11 = smov [#allocation2]  }
  0x3e   : > { %p784_p8 = scmp.ne.s32.totalorder %s1024_s14, %s783_s20  ;;  %s788_s17 = sshll.u32 %s873_s11, 4  ;;  %s789_s17 = int_to_ptr.vmem [resolvable:$false] %s788_s17 }
  0x3f   : > { %s790_s21 = scalar_lea.vmem %s789_s17, 256  ;;  %p791_p3 = scmp.lt.s32.totalorder %s1024_s14, %s789_s17 }
  0x40   : > { %p786_p10 = pnand %p784_p8, %p770_p0  ;;  %p792_p7 = scmp.lt.s32.totalorder %s790_s21, %s783_s20 }
  0x42   : > { %p787_p13 = pneg %p786_p10  ;;  %p793_p9 = por %p792_p7, %p791_p3 }
  0x44   : > { %p794_p2 = pnand %p793_p9, %p787_p13 }
  0x46   : > { %797 = shalt.err (!%p794_p2)
}
  0x47   : > { %681 = dma.hbm_to_vmem [thread:$0]  (!%p1020_p11), %s1018_s16, 128, %s1024_s14, %s249_s29  }
  0x48   : > { %p1169_p5 = scmp.ne.s32.totalorder %s1164_s9, 0 }
  0x49   : > { %s1054_s10 = sand.u32 (!%p1169_p5), 1, %s860_s25   ;;  %p1170_p0 = scmp.ne.s32.totalorder (!%p1169_p5), %s1162_s30, 0 }
  0x4a   : > { %268 = sbr.rel (%p1169_p5) target bundleno = 1562 (0x61a), region = 48  ;;  %s627_s22 = sshll.u32 (!%p1169_p5), %s1054_s10, 3 }
  0x4b   : > { %s271_s12 = scalar_lea.sflag (!%p1169_p5), [#allocation3], %s1054_s10  ;;  %s274_s23 = scalar_lea.vmem (!%p1169_p5), [#allocation2], %s627_s22 }
  0x51   : > { %843 = dma.done.wait (%p1170_p0), %s271_s12, 128  }
  0x52   : > { %845 = vsyncadd (%p1170_p0), %s271_s12, 4294967168  ;;  %p1171_p11 = scmp.eq.s32.totalorder %s939_s28, 0 }
  0x54   : > { %847 = dma.done.wait (%p1171_p11), [#allocation6], 256   ;;  %p1172_p1 = pmov %p1171_p11 }
  0x55   : > { %vm311_vm0 = vcmask 261120   ;;  %v310_v0 = vld [vmem:[%s274_s23] sm:$0xff]  ;;  %v728_v7 = vld [vmem:[#allocation5] sm:$0xff]   ;;  %v874_v8 = vmov 0.0   ;;  %vm875_vm1 = vmmov 0   ;;  %v729_v9 = vld [vmem:[#allocation5 + $0x8] sm:$0xff]  }
  0x56   : > { %849 = vsyncadd (%p1172_p1), [#allocation6], 4294967040  ;;  %v312_v1 = vsel %vm311_vm0, %v310_v0, 0.0  ;;  %650 = vmatprep.subr.bf16.mxu0 %v874_v8  ;;  %654 = vmatprep.mubr.msk.bf16.mxu0 %vm875_vm1, %v874_v8  ;;  %v630_v14 = vld [vmem:[%s1152_s1] ss:$0 sm:$0xff]  ;;  %s876_s15 = smov 96  }
  0x57   : > { %313 = vadd.xlane.f32.xlu0 %v312_v1  ;;  %651 = vmatpush3.bf16.msra.mxu0 %v728_v7  ;;  %v631_v16 = vld [vmem:[%s1153_s2] ss:$0 sm:$0xff]  ;;  %vm423_vm2 = vcmask 523520   ;;  %v731_v54 = vld [vmem:[%s1157_s6 + $0x8] sm:$0xff]   ;;  %s641_s9 = sshll.u32 %s939_s28, 7  ;;  %s308_s16 = scalar_lea.vmem [#allocation7], %s627_s22 }
  0x58   : > { %658 = vmatprep.subr.bf16.mxu1 %v874_v8  ;;  %652 = vmatprep.subr.bf16.mxu0 %v874_v8  ;;  %v730_v53 = vld [vmem:[%s1157_s6] sm:$0xff]   ;;  %s540_s14 = sshll.u32 %s308_s16, 4  ;;  %s1106_s20 = scalar_lea.hbm %s1158_s7, %s641_s9  ;;  %s1108_s14 = int_to_ptr.vmem [resolvable:$true] %s540_s14 }
  0x59   : > { %662 = vmatprep.mubr.msk.bf16.mxu1 %vm875_vm1, %v874_v8  ;;  %659 = vmatpush3.bf16.msra.mxu1 %v730_v53  ;;  %v635_v59 = vld [vmem:[%s1155_s4] ss:$0 sm:$0xff]  ;;  %s527_s11 = scalar_lea.sflag [#allocation4], %s1054_s10  ;;  %s798_s28 = scalar_lea.vmem %s1108_s14, 128 }
  0x5a   : > { %660 = vmatprep.subr.bf16.mxu1 %v874_v8  ;;  %v636_v61 = vld [vmem:[%s1156_s5] ss:$0 sm:$0xff]  ;;  %p799_p4 = scmp.ne.s32.totalorder %s1108_s14, %s798_s28  ;;  %s877_s22 = smov [#allocation7]  }
  0x5b   : > { %653 = vmatpush3.bf16.msra.mxu0 %v729_v9  ;;  %s802_s17 = sshll.u32 %s877_s22, 4  ;;  %s803_s17 = int_to_ptr.vmem [resolvable:$false] %s802_s17 }
  0x5c   : > { %p800_p6 = pnand %p799_p4, %p1009_p12  ;;  %s804_s21 = scalar_lea.vmem %s803_s17, 256 }
  0x5d   : > { %661 = vmatpush3.bf16.msra.mxu1 %v731_v54  ;;  %p805_p10 = scmp.lt.s32.totalorder %s1108_s14, %s803_s17  ;;  %p806_p13 = scmp.lt.s32.totalorder %s804_s21, %s798_s28 }
  0x5e   : > { %p801_p8 = pneg %p800_p6 }
  0x5f   : > { %p807_p3 = por %p806_p13, %p805_p10 }
  0x61   : > { %p808_p7 = pnand %p807_p3, %p801_p8 }
  0xe4   : > { %v314_v2 = vpop.xlane.xlu0 %313 }
  0xe5   : > { %v315_v3 = vmul.f32 0.03125, %v314_v2 }
  0xe7   : > { %v316_v4 = vsub.f32 %v310_v0, %v315_v3 }
  0xe9   : > { %v317_v5 = vmul.f32 %v316_v4, %v316_v4 }
  0xeb   : > { %v318_v6 = vsel %vm311_vm0, %v317_v5, 0.0 }
  0xec   : > { %319 = vadd.xlane.f32.xlu0 %v318_v6 }
 0x179   : > { %v320_v10 = vpop.xlane.xlu0 %319 }
 0x17a   : > { %v321_v11 = vmul.f32 0.03125, %v320_v10 }
 0x17c   : > { %v322_v12 = vadd.f32 1e-05, %v321_v11 }
 0x17e   : > { %732 = vrsqrt.f32 %v322_v12 }
 0x188   : > { %v733_v13 = vpop.eup %732 }
 0x189   : > { %v324_v15 = vmul.f32 %v733_v13, %v316_v4 }
 0x18b   : > { %v332_v17 = vmul.f32 %v630_v14, %v324_v15 }
 0x18d   : > { %v340_v18 = vadd.f32 %v631_v16, %v332_v17 }
 0x18f   : > { %v341_v19 = vpack.c.bf16 %v340_v18, %v340_v18 }
 0x191   : > { %655 = vmatmul.mubr.msk.bf16.vlgmr.msra.gmra.mrb[0].mxu0 %vm311_vm0, %v341_v19 }
 0x264   : > { %v395_v20 = vpop.f32.mrb[0].mxu0 }
 0x265   : > { %419 = vrot.lane.b32.xlu0 %v395_v20, %s876_s15  ;;  %v656_v21 = vpop.f32.mrb[1].mxu0  ;;  %v401_v22 = vmul.f32 %v395_v20, %v395_v20 }
 0x266   : > { %v398_v23 = vpop.f32.mrb[2].mxu0 }
 0x267   : > { %409 = vrot.lane.b32.xlu1 %v401_v22, %s876_s15  ;;  %v657_v24 = vpop.f32.mrb[3].mxu0  ;;  %v402_v25 = vsel %vm311_vm0, %v401_v22, 0.0 }
 0x284   : > { %403 = vadd.xlane.f32.xlu0 %v402_v25 }
 0x2d7   : > { %v420_v32 = vpop.permute.xlu0 %419 }
 0x2d9   : > { %v410_v26 = vpop.permute.xlu1 %409 }
 0x2da   : > { %v412_v27 = vsel %vm311_vm0, %v410_v26, 0.0 }
 0x2db   : > { %413 = vadd.xlane.f32.xlu1 %v412_v27 }
 0x311   : > { %v404_v41 = vpop.xlane.xlu0 %403 }
 0x312   : > { %v405_v42 = vmax.f32 %v404_v41, 1e-24 }
 0x368   : > { %v414_v28 = vpop.xlane.xlu1 %413 }
 0x369   : > { %v415_v29 = vmax.f32 %v414_v28, 1e-24 }
 0x36b   : > { %734 = vrsqrt.f32 %v415_v29 }
 0x36c   : > { %736 = vrsqrt.f32 %v405_v42 }
 0x375   : > { %v735_v30 = vpop.eup %734 }
 0x376   : > { %v417_v31 = vmul.f32 %v735_v30, %v395_v20  ;;  %v737_v43 = vpop.eup %736 }
 0x377   : > { %v407_v44 = vmul.f32 %v737_v43, %v395_v20 }
 0x378   : > { %v422_v33 = vmul.f32 %v420_v32, %v417_v31 }
 0x37a   : > { %v424_v34 = vsel %vm423_vm2, %v422_v33, 0.0 }
 0x37b   : > { %v425_v35 = vrot.slane %v424_v34, 4 }
 0x37d   : > { %v426_v36 = vadd.f32 %v425_v35, %v424_v34 }
 0x37f   : > { %v427_v37 = vrot.slane %v426_v36, 2 }
 0x381   : > { %v428_v38 = vadd.f32 %v427_v37, %v426_v36 }
 0x383   : > { %v429_v39 = vrot.slane %v428_v38, 1 }
 0x385   : > { %v430_v40 = vadd.f32 %v429_v39, %v428_v38 }
 0x387   : > { %432 = vrot.lane.b32.xlu1 %v430_v40, %s876_s15 }
 0x3f9   : > { %v433_v45 = vpop.permute.xlu1 %432 }
 0x3fa   : > { %v435_v46 = vmul.f32 %v433_v45, %v407_v44 }
 0x3fc   : > { %v436_v47 = vsel %vm311_vm0, %v435_v46, 0.0 }
 0x3fd   : > { %437 = vadd.xlane.f32.xlu1 %v436_v47 }
 0x48a   : > { %v438_v48 = vpop.xlane.xlu1 %437 }
 0x48b   : > { %v439_v49 = vmul.f32 0.03125, %v438_v48 }
 0x48d   : > { %v440_v50 = vsub.f32 %v435_v46, %v439_v49 }
 0x48f   : > { %v441_v51 = vmul.f32 %v440_v50, %v440_v50 }
 0x491   : > { %v442_v52 = vsel %vm311_vm0, %v441_v51, 0.0 }
 0x492   : > { %443 = vadd.xlane.f32.xlu0 %v442_v52 }
 0x51f   : > { %v444_v55 = vpop.xlane.xlu0 %443 }
 0x520   : > { %v445_v56 = vmul.f32 0.03125, %v444_v55 }
 0x522   : > { %v446_v57 = vadd.f32 1e-05, %v445_v56 }
 0x524   : > { %738 = vrsqrt.f32 %v446_v57 }
 0x52e   : > { %v739_v58 = vpop.eup %738 }
 0x52f   : > { %v448_v60 = vmul.f32 %v739_v58, %v440_v50 }
 0x531   : > { %v456_v62 = vmul.f32 %v635_v59, %v448_v60 }
 0x533   : > { %v464_v63 = vadd.f32 %v636_v61, %v456_v62 }
 0x535   : > { %v465_v0 = vpack.c.bf16 %v464_v63, %v464_v63 }
 0x537   : > { %663 = vmatmul.mubr.msk.bf16.vlgmr.msra.gmra.mrb[0].mxu1 %vm311_vm0, %v465_v0 }
 0x60a   : > { %v519_v1 = vpop.f32.mrb[0].mxu1 }
 0x60b   : > { %525 = vst.msk [vmem:[%s308_s16] sm:$0xff] %vm311_vm0, %v519_v1  ;;  %v664_v2 = vpop.f32.mrb[1].mxu1 }
 0x60c   : > { %v522_v3 = vpop.f32.mrb[2].mxu1 }
 0x60d   : > { %811 = shalt.err (!%p808_p7)
}
 0x60e   : > { %s812_s10 = scalar_lea.hbm %s1106_s20, 128  ;;  %s816_s30 = scalar_lea.hbm %s1158_s7, 256 }
 0x60f   : > { %p813_p9 = scmp.ne.s32.totalorder %s1106_s20, %s812_s10  ;;  %p817_p0 = scmp.lt.u32.totalorder %s1106_s20, %s1158_s7 }
 0x610   : > { %p818_p11 = scmp.lt.u32.totalorder %s816_s30, %s812_s10  ;;  %p820_p4 = scmp.lt.u32.totalorder %s812_s10, %s1106_s20 }
 0x611   : > { %p814_p2 = pnand %p813_p9, %p1009_p12 }
 0x612   : > { %p819_p1 = por %p818_p11, %p817_p0 }
 0x613   : > { %p815_p5 = pneg %p814_p2 }
 0x614   : > { %p821_p6 = por %p820_p4, %p819_p1 }
 0x616   : > { %p822_p8 = pnand %p821_p6, %p815_p5 }
 0x618   : > { %825 = shalt.err (!%p822_p8)
}
 0x619   : > { %672 = dma.vmem_to_hbm [thread:$0]  (%p1009_p12), %s1108_s14, 128, %s1106_s20, %s527_s11   ;;  %v665_v4 = vpop.f32.mrb[3].mxu1 }
 0x61a PF: > { %s552_s15 = sand.u32 1, %s856_s24   ;;  %p1173_p10 = scmp.ne.s32.totalorder %s1163_s8, 0 }
 0x61b   : > { %p1174_p13 = scmp.ge.s32.totalorder %s868_s27, 2  ;;  %s553_s29 = scalar_lea.sflag [#allocation4], %s552_s15 }
 0x61d   : > { %p683_p3 = pnand %p1174_p13, %p1173_p10 }
 0x61f   : > { %851 = dma.done.wait (!%p683_p3), %s553_s29, 128  }
 0x620   : > { %853 = vsyncadd (!%p683_p3), %s553_s29, 4294967168  ;;  %p21_p7 = scmp.ge.s32.totalorder %s974_s13, 4   ;;  %s1175_s24 = smov %s860_s25 }
 0x621   : > { %s1176_s25 = smov %s864_s26  ;;  %s1177_s26 = smov %s1005_s18 }
 0x622   : > { %s1178_s27 = smov %s974_s13  ;;  %23 = sbr.rel (!%p21_p7) target bundleno = 6 (0x6), region = 97 }
 0x629   :  { %558 = vsyncpa [#allocation3], 1 }
 0x62a   :  { %560 = vsyncpa [#allocation3 + $0x1], 1 }
 0x62b   :  { %561 = vsyncpa [#allocation6], 1 }
 0x62c   :  { %562 = vsyncpa [#allocation4], 1 }
 0x62d   :  { %564 = vsyncpa [#allocation4 + $0x1], 1 }

</bundles_post_ra>
